<compile_context>
chip_gen: v5e
topology: v5e:2x2
jax: 0.10.0
libtpu: 0.0.40
codegen_flags: <defaults>
</compile_context>

<pallas_src>
import functools

import jax
import jax.numpy as jnp
from jax import lax
from jax.experimental import pallas as pl
from jax.experimental.pallas import tpu as pltpu

_NORM_EPS_SQ = 1e-24  # matches F.normalize(eps=1e-12) clamp on the norm


def _round_up(x, m):
    return (x + m - 1) // m * m


def _vmem_capacity_bytes():
    try:
        info = pltpu.get_tpu_info()
        cap = int(getattr(info, "vmem_capacity_bytes", 0))
        if cap > 0:
            return cap
    except Exception:
        pass
    return 64 * 1024 * 1024  # v7x floor -- safe on every generation


def _sublane(*dtypes):
    m = 8
    for dt in dtypes:
        m = max(m, {4: 8, 2: 16, 1: 32}.get(jnp.dtype(dt).itemsize, 8))
    return m


def _normalize_scaled(x_ref, inv_temp, out_dtype):
    """Row-wise L2 normalize in f32 with 1/temp folded in; cast to out_dtype."""
    xf = x_ref[...].astype(jnp.float32)
    sq = jnp.sum(xf * xf, axis=1, keepdims=True)                 # [tb, 1]
    scale = lax.rsqrt(jnp.maximum(sq, _NORM_EPS_SQ)) * inv_temp
    return (xf * scale).astype(out_dtype)                        # [tb, D]


def _loss_kernel(x_ref, f_ref, st_ref, loss_ref, lse_ref, xn_ref,
                 m_scr, l_scr, stl_scr, sts_scr,
                 *, inv_temp, n_pad_cols, use_static_max, targets_normalized):
    k = pl.program_id(1)

    @pl.when(k == 0)
    def _init():
        # x block is resident across the whole cluster sweep: normalize once,
        # stash in the xn output block (VMEM-resident over k; reused by pass 2).
        xn_ref[...] = _normalize_scaled(x_ref, inv_temp, xn_ref.dtype)
        m_scr[...] = jnp.full(m_scr.shape,
                              inv_temp if use_static_max else -jnp.inf,
                              m_scr.dtype)
        l_scr[...] = jnp.zeros(l_scr.shape, l_scr.dtype)
        stl_scr[...] = jnp.zeros(stl_scr.shape, stl_scr.dtype)
        if not targets_normalized:
            sts_scr[...] = jnp.zeros(sts_scr.shape, sts_scr.dtype)

    # Similarity tile on the MXU: contract the feature (lane) dim of both
    # operands directly -- no explicit transpose of the streamed features tile.
    logits = lax.dot_general(
        xn_ref[...], f_ref[...],
        dimension_numbers=(((1,), (1,)), ((), ())),
        preferred_element_type=jnp.float32)                      # [tb, tn]

    st = st_ref[...].astype(jnp.float32)                         # [tb, tn]

    if use_static_max:
        # Unit-norm operands => logits <= inv_temp: no running max / rescale.
        l_scr[...] += jnp.sum(jnp.exp(logits - inv_temp), axis=1, keepdims=True)
    else:
        m_new = jnp.maximum(m_scr[...], jnp.max(logits, axis=1, keepdims=True))
        alpha = jnp.exp(m_scr[...] - m_new)
        l_scr[...] = alpha * l_scr[...] + jnp.sum(jnp.exp(logits - m_new),
                                                  axis=1, keepdims=True)
        m_scr[...] = m_new

    # Soft-label cross-entropy pieces (padded columns have st == 0: contribute 0).
    stl_scr[...] += jnp.sum(st * logits, axis=1, keepdims=True)
    if not targets_normalized:
        sts_scr[...] += jnp.sum(st, axis=1, keepdims=True)

    @pl.when(k == pl.num_programs(1) - 1)
    def _finalize():
        m = m_scr[...]
        l = l_scr[...]
        if n_pad_cols:
            # Padded feature rows are exactly zero => padded logits are exactly
            # 0; remove their exp(0 - m) mass once instead of masking per step.
            l = jnp.maximum(l - n_pad_cols * jnp.exp(-m), 1e-30)
        lse = m + jnp.log(l)                                     # [tb, 1]
        lse_ref[...] = lse
        sts = 1.0 if targets_normalized else sts_scr[...]
        # -(st * log softmax).sum = lse * sum(st) - sum(st * logits)
        loss_ref[...] = lse * sts - stl_scr[...]


def _probs_kernel(xn_ref, f_ref, lse_ref, probs_ref):
    # xn_ref already holds normalize(x) * (1/temp) from pass 1.
    logits = lax.dot_general(
        xn_ref[...], f_ref[...],
        dimension_numbers=(((1,), (1,)), ((), ())),
        preferred_element_type=jnp.float32)                      # [tb, tn]
    probs_ref[...] = jnp.exp(logits - lse_ref[...]).astype(probs_ref.dtype)


def cluster_memory_soft_label(inputs, features, soft_targets, *, temp=0.05,
                              out_probs=False, compute_dtype=None,
                              targets_normalized=False,
                              features_normalized=False,
                              probs_dtype=jnp.float32):
    """inputs [B, D], features [N, D] memory bank, soft_targets [B, N].

    Returns scalar loss (and probs [B, N] if out_probs=True).
      compute_dtype:       MXU operand dtype (None = keep input dtype; bf16
                           halves the streamed-bank HBM traffic).
      targets_normalized:  soft_targets rows sum to 1 -> skip sum(st) reduce.
      features_normalized: memory bank rows are unit-norm -> static-max softmax.
    """
    B, D = inputs.shape
    N, D2 = features.shape
    assert D == D2 and soft_targets.shape == (B, N)

    inv_temp = float(1.0 / temp)
    cd = jnp.dtype(compute_dtype) if compute_dtype is not None else jnp.dtype(inputs.dtype)
    x_bytes = jnp.dtype(inputs.dtype).itemsize
    cd_bytes = cd.itemsize
    st_bytes = jnp.dtype(soft_targets.dtype).itemsize
    p_bytes = jnp.dtype(probs_dtype).itemsize

    # Static-max softmax is only exact when |logit| <= 1/temp (unit-norm bank)
    # and exp(-2/temp) stays comfortably representable in f32.
    use_static_max = bool(features_normalized) and (2.0 * inv_temp < 60.0)

    # --- tile sizing, driven by an explicit per-chip VMEM budget --------------
    vmem_cap = _vmem_capacity_bytes()
    budget = min(vmem_cap // 2, 64 << 20) - (4 << 20)   # ~60 MiB v5e/v6e, ~28 MiB v7x

    sub = _sublane(inputs.dtype, soft_targets.dtype, cd)
    tb = min(_round_up(B, sub), 256)

    def _fixed(tb_):
        return (2 * tb_ * D * x_bytes        # inputs  (double-buffered)
                + 2 * tb_ * D * cd_bytes     # xn output block (resident over k)
                + 4 * tb_ * 4                # loss + lse output blocks
                + 4 * tb_ * 4)               # scratch stats

    def _per_tn(tb_):
        pt = 2 * D * cd_bytes + 2 * tb_ * st_bytes     # features + soft targets
        if out_probs:
            pt += 2 * tb_ * p_bytes                    # pass-2 probs block shares tn/tb
        return pt

    while True:
        tn_fit = max(budget - _fixed(tb), 0) // _per_tn(tb) // 128 * 128
        if tn_fit >= 128 or tb <= sub:
            break
        tb = max(sub, _round_up(tb // 2, sub))

    n128 = _round_up(N, 128)
    tn = int(min(max(tn_fit, 128), n128))
    resident = tn >= n128            # whole bank fits: fetched from HBM once
    if resident:
        tn = n128

    # v7x has two TensorCores: ensure the "parallel" B axis has >= 2 tiles when
    # that is free (resident bank => splitting adds no features re-reads).
    if resident and _round_up(B, tb) // tb == 1 and tb > sub:
        tb = max(sub, _round_up(tb // 2, sub))

    B_pad = _round_up(B, tb)
    N_pad = _round_up(N, tn)
    n_pad_cols = N_pad - N

    # --- pad + optional bf16 cast of the streamed memory bank -----------------
    x_p = inputs if B_pad == B else jnp.pad(inputs, ((0, B_pad - B), (0, 0)))
    f_p = features.astype(cd) if cd != features.dtype else features
    if N_pad != N:
        f_p = jnp.pad(f_p, ((0, N_pad - N), (0, 0)))
    st_p = soft_targets
    if B_pad != B or N_pad != N:
        st_p = jnp.pad(soft_targets, ((0, B_pad - B), (0, N_pad - N)))

    grid = (B_pad // tb, N_pad // tn)

    need1 = _fixed(tb) + (2 * D * cd_bytes + 2 * tb * st_bytes) * tn
    vmem1 = int(min(int(vmem_cap * 0.9), max(need1 + (8 << 20), 32 << 20)))

    loss_kernel = functools.partial(
        _loss_kernel, inv_temp=inv_temp, n_pad_cols=n_pad_cols,
        use_static_max=use_static_max,
        targets_normalized=bool(targets_normalized))

    # --- pass 1: streamed online-softmax loss (+ per-row lse, cached xn) ------
    loss_rows, lse, xn_scaled = pl.pallas_call(
        loss_kernel,
        grid_spec=pltpu.PrefetchScalarGridSpec(
            num_scalar_prefetch=0,
            grid=grid,
            in_specs=[
                pl.BlockSpec((tb, D), lambda i, k: (i, 0)),    # inputs (resident over k)
                pl.BlockSpec((tn, D), lambda i, k: (k, 0)),    # features (streamed/resident)
                pl.BlockSpec((tb, tn), lambda i, k: (i, k)),   # soft targets
            ],
            out_specs=[
                pl.BlockSpec((tb, 1), lambda i, k: (i, 0)),    # per-row loss
                pl.BlockSpec((tb, 1), lambda i, k: (i, 0)),    # per-row logsumexp
                pl.BlockSpec((tb, D), lambda i, k: (i, 0)),    # xn * (1/temp)
            ],
            scratch_shapes=[
                pltpu.VMEM((tb, 1), jnp.float32),              # running max
                pltpu.VMEM((tb, 1), jnp.float32),              # running sum
                pltpu.VMEM((tb, 1), jnp.float32),              # sum(st * logits)
                pltpu.VMEM((tb, 1), jnp.float32),              # sum(st)
            ]),
        out_shape=(
            jax.ShapeDtypeStruct((B_pad, 1), jnp.float32),
            jax.ShapeDtypeStruct((B_pad, 1), jnp.float32),
            jax.ShapeDtypeStruct((B_pad, D), cd),
        ),
        compiler_params=pltpu.CompilerParams(
            dimension_semantics=("parallel", "arbitrary"),
            vmem_limit_bytes=vmem1),
    )(x_p, f_p, st_p)

    loss = jnp.mean(loss_rows[:B, 0])
    if not out_probs:
        return loss

    # --- pass 2 (optional): probs = exp(logits - lse), fully parallel ---------
    need2 = (2 * tb * D * cd_bytes + 2 * tn * D * cd_bytes
             + 4 * tb * 4 + 2 * tb * tn * p_bytes)
    vmem2 = int(min(int(vmem_cap * 0.9), max(need2 + (8 << 20), 32 << 20)))

    probs = pl.pallas_call(
        _probs_kernel,
        grid_spec=pltpu.PrefetchScalarGridSpec(
            num_scalar_prefetch=0,
            grid=grid,
            in_specs=[
                pl.BlockSpec((tb, D), lambda i, j: (i, 0)),    # xn*(1/temp) from pass 1
                pl.BlockSpec((tn, D), lambda i, j: (j, 0)),    # features
                pl.BlockSpec((tb, 1), lambda i, j: (i, 0)),    # lse from pass 1
            ],
            out_specs=pl.BlockSpec((tb, tn), lambda i, j: (i, j)),
        ),
        out_shape=jax.ShapeDtypeStruct((B_pad, N_pad), probs_dtype),
        compiler_params=pltpu.CompilerParams(
            dimension_semantics=("parallel", "parallel"),
            vmem_limit_bytes=vmem2),
    )(xn_scaled, f_p, lse)
    return loss, probs[:B, :N]


def _reference(inputs, features, soft_targets, temp=0.05):
    xn = inputs / jnp.maximum(
        jnp.linalg.norm(inputs, axis=1, keepdims=True), 1e-12)
    logits = xn @ features.T / temp
    probs = jax.nn.softmax(logits, axis=1)
    return -(soft_targets * jnp.log(probs)).sum(axis=1).mean(), probs


if __name__ == "__main__":
    key = jax.random.PRNGKey(0)
    k1, k2, k3 = jax.random.split(key, 3)

    B, D, N = 8, 32, 16          # batch, num_features, num_samples (clusters)
    temp = 0.05

    inputs = jax.random.normal(k1, (B, D), dtype=jnp.float32)
    feats = jax.random.normal(k2, (N, D), dtype=jnp.float32)
    feats = feats / jnp.linalg.norm(feats, axis=1, keepdims=True)
    soft_targets = jax.nn.softmax(jax.random.normal(k3, (B, N)), axis=1)

    ref_loss, ref_probs = _reference(inputs, feats, soft_targets, temp=temp)

    # 1) f32 MXU, static-max fast path (bank is unit-norm), loss + probs.
    loss, probs = jax.block_until_ready(cluster_memory_soft_label(
        inputs, feats, soft_targets, temp=temp, out_probs=True,
        features_normalized=True))
    assert jnp.allclose(loss, ref_loss, rtol=1e-5, atol=1e-5), (loss, ref_loss)
    assert jnp.allclose(probs, ref_probs, rtol=1e-5, atol=1e-5)

    # 2) f32 MXU, online-softmax path + normalized-targets shortcut, loss only.
    loss2 = jax.block_until_ready(cluster_memory_soft_label(
        inputs, feats, soft_targets, temp=temp, targets_normalized=True))
    assert jnp.allclose(loss2, ref_loss, rtol=1e-5, atol=1e-5), (loss2, ref_loss)

    # 3) bf16 MXU operands (halves the streamed-bank HBM traffic).
    loss3 = jax.block_until_ready(cluster_memory_soft_label(
        inputs, feats, soft_targets, temp=temp, compute_dtype=jnp.bfloat16))
    assert jnp.allclose(loss3, ref_loss, rtol=5e-2, atol=5e-2), (loss3, ref_loss)

    print("KERNEL_OK")
</pallas_src>

<mosaic_0001>
module attributes {stable_mosaic.version = 11 : i64} {
  func.func @_loss_kernel(%arg0: i32, %arg1: i32, %arg2: memref<8x32xf32, #tpu.memory_space<vmem>>, %arg3: memref<128x32xf32, #tpu.memory_space<vmem>>, %arg4: memref<8x128xf32, #tpu.memory_space<vmem>>, %arg5: memref<8x1xf32, #tpu.memory_space<vmem>>, %arg6: memref<8x1xf32, #tpu.memory_space<vmem>>, %arg7: memref<8x32xf32, #tpu.memory_space<vmem>>, %arg8: memref<8x1xf32, #tpu.memory_space<vmem>>, %arg9: memref<8x1xf32, #tpu.memory_space<vmem>>, %arg10: memref<8x1xf32, #tpu.memory_space<vmem>>, %arg11: memref<8x1xf32, #tpu.memory_space<vmem>>) attributes {dimension_semantics = [#tpu.dimension_semantics<parallel>, #tpu.dimension_semantics<arbitrary>], iteration_bounds = array<i64: 1, 1>, scalar_prefetch = 0 : i64, scratch_operands = 4 : i64, tpu.core_type = #tpu.core_type<tc>, window_params = [{transform_indices = @transform_0, window_bounds = array<i64: 8, 32>}, {transform_indices = @transform_1, window_bounds = array<i64: 128, 32>}, {transform_indices = @transform_2, window_bounds = array<i64: 8, 128>}, {transform_indices = @transform_3, window_bounds = array<i64: 8, 1>}, {transform_indices = @transform_4, window_bounds = array<i64: 8, 1>}, {transform_indices = @transform_5, window_bounds = array<i64: 8, 32>}]} {
    %c0_i32 = arith.constant 0 : i32
    %0 = arith.cmpi eq, %arg1, %c0_i32 : i32
    %1 = arith.extui %0 : i1 to i32
    %c0_i32_0 = arith.constant 0 : i32
    %2 = arith.cmpi ne, %1, %c0_i32_0 : i32
    scf.if %2 {
      %c0_24 = arith.constant 0 : index
      %c0_25 = arith.constant 0 : index
      %29 = vector.load %arg2[%c0_24, %c0_25] : memref<8x32xf32, #tpu.memory_space<vmem>>, vector<8x32xf32>
      %30 = arith.mulf %29, %29 : vector<8x32xf32>
      %cst_26 = arith.constant dense<0.000000e+00> : vector<8xf32>
      %31 = vector.multi_reduction <add>, %30, %cst_26 [1] : vector<8x32xf32> to vector<8xf32>
      %32 = vector.shape_cast %31 : vector<8xf32> to vector<8x1xf32>
      %cst_27 = arith.constant 1.000000e-24 : f32
      %33 = vector.broadcast %cst_27 : f32 to vector<8x1xf32>
      %34 = arith.maximumf %32, %33 : vector<8x1xf32>
      %35 = math.rsqrt %34 : vector<8x1xf32>
      %cst_28 = arith.constant 2.000000e+01 : f32
      %36 = vector.broadcast %cst_28 : f32 to vector<8x1xf32>
      %37 = arith.mulf %35, %36 : vector<8x1xf32>
      %38 = vector.broadcast %37 : vector<8x1xf32> to vector<8x32xf32>
      %39 = arith.mulf %29, %38 : vector<8x32xf32>
      %c0_29 = arith.constant 0 : index
      %c0_30 = arith.constant 0 : index
      %40 = vector.load %arg7[%c0_29, %c0_30] : memref<8x32xf32, #tpu.memory_space<vmem>>, vector<8x32xf32>
      tpu.vector_store %arg7[%c0_29, %c0_30], %39 {strides = array<i32>} : memref<8x32xf32, #tpu.memory_space<vmem>>, vector<8x32xf32>,
      %cst_31 = arith.constant 2.000000e+01 : f32
      %41 = vector.broadcast %cst_31 : f32 to vector<8x1xf32>
      %c0_32 = arith.constant 0 : index
      %c0_33 = arith.constant 0 : index
      %42 = vector.load %arg8[%c0_32, %c0_33] : memref<8x1xf32, #tpu.memory_space<vmem>>, vector<8x1xf32>
      tpu.vector_store %arg8[%c0_32, %c0_33], %41 {strides = array<i32>} : memref<8x1xf32, #tpu.memory_space<vmem>>, vector<8x1xf32>,
      %cst_34 = arith.constant 0.000000e+00 : f32
      %43 = vector.broadcast %cst_34 : f32 to vector<8x1xf32>
      %c0_35 = arith.constant 0 : index
      %c0_36 = arith.constant 0 : index
      %44 = vector.load %arg9[%c0_35, %c0_36] : memref<8x1xf32, #tpu.memory_space<vmem>>, vector<8x1xf32>
      tpu.vector_store %arg9[%c0_35, %c0_36], %43 {strides = array<i32>} : memref<8x1xf32, #tpu.memory_space<vmem>>, vector<8x1xf32>,
      %cst_37 = arith.constant 0.000000e+00 : f32
      %45 = vector.broadcast %cst_37 : f32 to vector<8x1xf32>
      %c0_38 = arith.constant 0 : index
      %c0_39 = arith.constant 0 : index
      %46 = vector.load %arg10[%c0_38, %c0_39] : memref<8x1xf32, #tpu.memory_space<vmem>>, vector<8x1xf32>
      tpu.vector_store %arg10[%c0_38, %c0_39], %45 {strides = array<i32>} : memref<8x1xf32, #tpu.memory_space<vmem>>, vector<8x1xf32>,
      %cst_40 = arith.constant 0.000000e+00 : f32
      %47 = vector.broadcast %cst_40 : f32 to vector<8x1xf32>
      %c0_41 = arith.constant 0 : index
      %c0_42 = arith.constant 0 : index
      %48 = vector.load %arg11[%c0_41, %c0_42] : memref<8x1xf32, #tpu.memory_space<vmem>>, vector<8x1xf32>
      tpu.vector_store %arg11[%c0_41, %c0_42], %47 {strides = array<i32>} : memref<8x1xf32, #tpu.memory_space<vmem>>, vector<8x1xf32>,
    } else {
    }
    %c0 = arith.constant 0 : index
    %c0_1 = arith.constant 0 : index
    %3 = vector.load %arg7[%c0, %c0_1] : memref<8x32xf32, #tpu.memory_space<vmem>>, vector<8x32xf32>
    %c0_2 = arith.constant 0 : index
    %c0_3 = arith.constant 0 : index
    %4 = vector.load %arg3[%c0_2, %c0_3] : memref<128x32xf32, #tpu.memory_space<vmem>>, vector<128x32xf32>
    %cst = arith.constant dense<0.000000e+00> : vector<8x128xf32>
    %5 = tpu.matmul %3, %4, %cst {dimension_numbers = #tpu.dot_dimension_numbers<[1], [1], [0], [0], [0, 0, 1, 0], [], []>} : vector<8x32xf32>, vector<128x32xf32>, vector<8x128xf32> -> vector<8x128xf32>
    %c0_4 = arith.constant 0 : index
    %c0_5 = arith.constant 0 : index
    %6 = vector.load %arg4[%c0_4, %c0_5] : memref<8x128xf32, #tpu.memory_space<vmem>>, vector<8x128xf32>
    %c0_6 = arith.constant 0 : index
    %c0_7 = arith.constant 0 : index
    %7 = vector.load %arg9[%c0_6, %c0_7] : memref<8x1xf32, #tpu.memory_space<vmem>>, vector<8x1xf32>
    %cst_8 = arith.constant 2.000000e+01 : f32
    %8 = vector.broadcast %cst_8 : f32 to vector<8x128xf32>
    %9 = arith.subf %5, %8 : vector<8x128xf32>
    %10 = math.exp %9 : vector<8x128xf32>
    %cst_9 = arith.constant dense<0.000000e+00> : vector<8xf32>
    %11 = vector.multi_reduction <add>, %10, %cst_9 [1] : vector<8x128xf32> to vector<8xf32>
    %12 = vector.shape_cast %11 : vector<8xf32> to vector<8x1xf32>
    %13 = arith.addf %7, %12 : vector<8x1xf32>
    %c0_10 = arith.constant 0 : index
    %c0_11 = arith.constant 0 : index
    %14 = vector.load %arg9[%c0_10, %c0_11] : memref<8x1xf32, #tpu.memory_space<vmem>>, vector<8x1xf32>
    tpu.vector_store %arg9[%c0_10, %c0_11], %13 {strides = array<i32>} : memref<8x1xf32, #tpu.memory_space<vmem>>, vector<8x1xf32>,
    %c0_12 = arith.constant 0 : index
    %c0_13 = arith.constant 0 : index
    %15 = vector.load %arg10[%c0_12, %c0_13] : memref<8x1xf32, #tpu.memory_space<vmem>>, vector<8x1xf32>
    %16 = arith.mulf %6, %5 : vector<8x128xf32>
    %cst_14 = arith.constant dense<0.000000e+00> : vector<8xf32>
    %17 = vector.multi_reduction <add>, %16, %cst_14 [1] : vector<8x128xf32> to vector<8xf32>
    %18 = vector.shape_cast %17 : vector<8xf32> to vector<8x1xf32>
    %19 = arith.addf %15, %18 : vector<8x1xf32>
    %c0_15 = arith.constant 0 : index
    %c0_16 = arith.constant 0 : index
    %20 = vector.load %arg10[%c0_15, %c0_16] : memref<8x1xf32, #tpu.memory_space<vmem>>, vector<8x1xf32>
    tpu.vector_store %arg10[%c0_15, %c0_16], %19 {strides = array<i32>} : memref<8x1xf32, #tpu.memory_space<vmem>>, vector<8x1xf32>,
    %c0_17 = arith.constant 0 : index
    %c0_18 = arith.constant 0 : index
    %21 = vector.load %arg11[%c0_17, %c0_18] : memref<8x1xf32, #tpu.memory_space<vmem>>, vector<8x1xf32>
    %cst_19 = arith.constant dense<0.000000e+00> : vector<8xf32>
    %22 = vector.multi_reduction <add>, %6, %cst_19 [1] : vector<8x128xf32> to vector<8xf32>
    %23 = vector.shape_cast %22 : vector<8xf32> to vector<8x1xf32>
    %24 = arith.addf %21, %23 : vector<8x1xf32>
    %c0_20 = arith.constant 0 : index
    %c0_21 = arith.constant 0 : index
    %25 = vector.load %arg11[%c0_20, %c0_21] : memref<8x1xf32, #tpu.memory_space<vmem>>, vector<8x1xf32>
    tpu.vector_store %arg11[%c0_20, %c0_21], %24 {strides = array<i32>} : memref<8x1xf32, #tpu.memory_space<vmem>>, vector<8x1xf32>,
    %c0_i32_22 = arith.constant 0 : i32
    %26 = arith.cmpi eq, %arg1, %c0_i32_22 : i32
    %27 = arith.extui %26 : i1 to i32
    %c0_i32_23 = arith.constant 0 : i32
    %28 = arith.cmpi ne, %27, %c0_i32_23 : i32
    scf.if %28 {
      %c0_24 = arith.constant 0 : index
      %c0_25 = arith.constant 0 : index
      %29 = vector.load %arg8[%c0_24, %c0_25] : memref<8x1xf32, #tpu.memory_space<vmem>>, vector<8x1xf32>
      %c0_26 = arith.constant 0 : index
      %c0_27 = arith.constant 0 : index
      %30 = vector.load %arg9[%c0_26, %c0_27] : memref<8x1xf32, #tpu.memory_space<vmem>>, vector<8x1xf32>
      %cst_28 = arith.constant 0.000000e+00 : f32
      %31 = vector.broadcast %cst_28 : f32 to vector<8x1xf32>
      %32 = arith.subf %31, %29 : vector<8x1xf32>
      %33 = math.exp %32 : vector<8x1xf32>
      %cst_29 = arith.constant 1.120000e+02 : f32
      %34 = vector.broadcast %cst_29 : f32 to vector<8x1xf32>
      %35 = arith.mulf %34, %33 : vector<8x1xf32>
      %36 = arith.subf %30, %35 : vector<8x1xf32>
      %cst_30 = arith.constant 1.000000e-30 : f32
      %37 = vector.broadcast %cst_30 : f32 to vector<8x1xf32>
      %38 = arith.maximumf %36, %37 : vector<8x1xf32>
      %39 = math.log %38 : vector<8x1xf32>
      %40 = arith.addf %29, %39 : vector<8x1xf32>
      %c0_31 = arith.constant 0 : index
      %c0_32 = arith.constant 0 : index
      %41 = vector.load %arg6[%c0_31, %c0_32] : memref<8x1xf32, #tpu.memory_space<vmem>>, vector<8x1xf32>
      tpu.vector_store %arg6[%c0_31, %c0_32], %40 {strides = array<i32>} : memref<8x1xf32, #tpu.memory_space<vmem>>, vector<8x1xf32>,
      %c0_33 = arith.constant 0 : index
      %c0_34 = arith.constant 0 : index
      %42 = vector.load %arg11[%c0_33, %c0_34] : memref<8x1xf32, #tpu.memory_space<vmem>>, vector<8x1xf32>
      %43 = arith.mulf %40, %42 : vector<8x1xf32>
      %c0_35 = arith.constant 0 : index
      %c0_36 = arith.constant 0 : index
      %44 = vector.load %arg10[%c0_35, %c0_36] : memref<8x1xf32, #tpu.memory_space<vmem>>, vector<8x1xf32>
      %45 = arith.subf %43, %44 : vector<8x1xf32>
      %c0_37 = arith.constant 0 : index
      %c0_38 = arith.constant 0 : index
      %46 = vector.load %arg5[%c0_37, %c0_38] : memref<8x1xf32, #tpu.memory_space<vmem>>, vector<8x1xf32>
      tpu.vector_store %arg5[%c0_37, %c0_38], %45 {strides = array<i32>} : memref<8x1xf32, #tpu.memory_space<vmem>>, vector<8x1xf32>,
    } else {
    }
    return
  }
  func.func @transform_0(%arg0: i32, %arg1: i32) -> (i32, i32) {
    %c0_i32 = arith.constant 0 : i32
    %c0_i32_0 = arith.constant 0 : i32
    return %arg0, %c0_i32 : i32, i32
  }
  func.func @transform_1(%arg0: i32, %arg1: i32) -> (i32, i32) {
    %c0_i32 = arith.constant 0 : i32
    %c0_i32_0 = arith.constant 0 : i32
    return %arg1, %c0_i32 : i32, i32
  }
  func.func @transform_2(%arg0: i32, %arg1: i32) -> (i32, i32) {
    %c0_i32 = arith.constant 0 : i32
    return %arg0, %arg1 : i32, i32
  }
  func.func @transform_3(%arg0: i32, %arg1: i32) -> (i32, i32) {
    %c0_i32 = arith.constant 0 : i32
    %c0_i32_0 = arith.constant 0 : i32
    return %arg0, %c0_i32 : i32, i32
  }
  func.func @transform_4(%arg0: i32, %arg1: i32) -> (i32, i32) {
    %c0_i32 = arith.constant 0 : i32
    %c0_i32_0 = arith.constant 0 : i32
    return %arg0, %c0_i32 : i32, i32
  }
  func.func @transform_5(%arg0: i32, %arg1: i32) -> (i32, i32) {
    %c0_i32 = arith.constant 0 : i32
    %c0_i32_0 = arith.constant 0 : i32
    return %arg0, %c0_i32 : i32, i32
  }
}

</mosaic_0001>

<bundles_post_ra>
// kernel: tpu_custom_call.1
= control target key start
LH: loop header
LB: loop body
LE: loop exit
PB: predicated region body
PF: predicated region fallthrough
CT: control target
= control target key end

     0   :  { %vm24_vm0 = vcmask 261120   ;;  %s380_s0 = inlined_call_operand.vmem [shape: f32[8,32], index: 0, kind: input, shape index: {}]   ;;  %s381_s1 = inlined_call_operand.vmem [shape: f32[128,32], index: 1, kind: input, shape index: {}]   ;;  %s382_s2 = inlined_call_operand.vmem [shape: f32[8,128], index: 2, kind: input, shape index: {}]   ;;  %s383_s3 = inlined_call_operand.vmem [shape: f32[8,1], index: 3, kind: output, shape index: {0}]   ;;  %s384_s4 = inlined_call_operand.vmem [shape: f32[8,1], index: 4, kind: output, shape index: {1}]   ;;  %s385_s5 = inlined_call_operand.hbm [shape: f32[8,32], index: 5, kind: output, shape index: {2}]  }
   0x1   :  { %v22_v0 = vld [vmem:[%s380_s0] sm:$0xff]  ;;  %v63_v1 = vld [vmem:[%s381_s1 + $0x78] sm:$0xff]  ;;  %v62_v3 = vld [vmem:[%s381_s1 + $0x70] sm:$0xff] }
   0x2   :  { %v23_v2 = vmul.f32 %v22_v0, %v22_v0  ;;  %201 = vmatpush.xpose.msk.msra.mxu0 %vm24_vm0, %v63_v1 }
   0x4   :  { %v25_v4 = vsel %vm24_vm0, %v23_v2, 0.0 }
   0x5   :  { %11 = vsyncpa [#allocation7], 0  ;;  %26 = vadd.xlane.f32.xlu0 %v25_v4  ;;  %v61_v5 = vld [vmem:[%s381_s1 + $0x68] sm:$0xff]  ;;  %v60_v6 = vld [vmem:[%s381_s1 + $0x60] sm:$0xff]  ;;  %vm42_vm4 = vcmask 7168   ;;  %v256_v32 = vmov 20.0  }
   0x6   :  { %202 = vmatpush.xpose.msk.msra.mxu0 %vm24_vm0, %v62_v3  ;;  %v59_v7 = vld [vmem:[%s381_s1 + $0x58] sm:$0xff]  ;;  %v58_v8 = vld [vmem:[%s381_s1 + $0x50] sm:$0xff]  ;;  %v57_v9 = vld [vmem:[%s381_s1 + $0x48] sm:$0xff]  ;;  %43 = vst.msk [vmem:[#allocation2] sm:$0xff] %vm42_vm4, %v256_v32  ;;  %v257_v33 = vmov 0.0   ;;  %s188_s29 = sshll.u32 %s385_s5, 4  ;;  %s189_s29 = int_to_ptr.hbm [resolvable:$true] %s188_s29 }
   0x7   :  { %v56_v10 = vld [vmem:[%s381_s1 + $0x40] sm:$0xff]  ;;  %v55_v11 = vld [vmem:[%s381_s1 + $0x38] sm:$0xff]  ;;  %v54_v12 = vld [vmem:[%s381_s1 + $0x30] sm:$0xff]  ;;  %46 = vst.msk [vmem:[#allocation5] sm:$0xff] %vm42_vm4, %v257_v33 }
   0x8   :  { %v53_v13 = vld [vmem:[%s381_s1 + $0x28] sm:$0xff]  ;;  %v52_v14 = vld [vmem:[%s381_s1 + $0x20] sm:$0xff]  ;;  %v51_v15 = vld [vmem:[%s381_s1 + $0x18] sm:$0xff]  ;;  %44 = vst.msk [vmem:[#allocation3] sm:$0xff] %vm42_vm4, %v257_v33 }
   0x9   :  { %v50_v16 = vld [vmem:[%s381_s1 + $0x10] sm:$0xff]  ;;  %v49_v17 = vld [vmem:[%s381_s1 + $0x8] sm:$0xff]  ;;  %v48_v18 = vld [vmem:[%s381_s1] sm:$0xff]  ;;  %45 = vst.msk [vmem:[#allocation4] sm:$0xff] %vm42_vm4, %v257_v33  ;;  %s258_s1 = smov [#allocation6]  }
   0xa   :  { %203 = vmatpush.xpose.msk.msra.mxu0 %vm24_vm0, %v61_v5  ;;  %v136_v21 = vld [vmem:[%s382_s2] sm:$0xff]  ;;  %s186_s2 = sshll.u32 %s258_s1, 4  ;;  %s187_s2 = int_to_ptr.vmem [resolvable:$true] %s186_s2 }
   0xb   :  { %153 = vadd.xlane.f32.xlu1 %v136_v21 }
   0xd   :  { %v160_v42 = vld [vmem:[#allocation2] sm:$0xff] }
   0xe   :  { %204 = vmatpush.xpose.msk.msra.mxu0 %vm24_vm0, %v60_v6  ;;  %v152_v35 = vld [vmem:[#allocation5] sm:$0xff]  ;;  %v162_v44 = vsub.f32 0.0, %v160_v42 }
   0xf   :  { %v137_v48 = vld [vmem:[#allocation3] sm:$0xff] }
  0x10   :  { %v146_v43 = vld [vmem:[#allocation4] sm:$0xff]  ;;  %v163_v47 = vmul.f32 1.442695, %v162_v44 }
  0x12   :  { %205 = vmatpush.xpose.msk.msra.mxu0 %vm24_vm0, %v59_v7 }
  0x16   :  { %206 = vmatpush.xpose.msk.msra.mxu0 %vm24_vm0, %v58_v8 }
  0x1a   :  { %207 = vmatpush.xpose.msk.msra.mxu0 %vm24_vm0, %v57_v9 }
  0x1e   :  { %208 = vmatpush.xpose.msk.msra.mxu0 %vm24_vm0, %v56_v10 }
  0x22   :  { %209 = vmatpush.xpose.msk.msra.mxu0 %vm24_vm0, %v55_v11 }
  0x26   :  { %210 = vmatpush.xpose.msk.msra.mxu0 %vm24_vm0, %v54_v12 }
  0x2a   :  { %211 = vmatpush.xpose.msk.msra.mxu0 %vm24_vm0, %v53_v13 }
  0x2e   :  { %212 = vmatpush.xpose.msk.msra.mxu0 %vm24_vm0, %v52_v14 }
  0x32   :  { %213 = vmatpush.xpose.msk.msra.mxu0 %vm24_vm0, %v51_v15 }
  0x36   :  { %214 = vmatpush.xpose.msk.msra.mxu0 %vm24_vm0, %v50_v16 }
  0x3a   :  { %215 = vmatpush.xpose.msk.msra.mxu0 %vm24_vm0, %v49_v17 }
  0x3e   :  { %216 = vmatpush.xpose.msk.msra.mxu0 %vm24_vm0, %v48_v18 }
  0x78   :  { %v27_v19 = vpop.xlane.xlu0 %26 }
  0x79   :  { %v28_v20 = vmax.f32 %v27_v19, 1e-24 }
  0x7b   :  { %222 = vrsqrt.f32 %v28_v20  ;;  %vm35_vm2 = vweird.f32 %v28_v20 }
  0x7e   :  { %v154_v34 = vpop.xlane.xlu1 %153 }
  0x7f   :  { %v155_v36 = vadd.f32 %v154_v34, %v152_v35 }
  0x81   :  { %v223_v22 = vpop.eup %222  ;;  %156 = vst.msk [vmem:[#allocation5] sm:$0xff] %vm42_vm4, %v155_v36 }
  0x82   :  { %v30_v23 = vmul.f32 %v223_v22, %v28_v20  ;;  %vm36_vm1 = vweird.f32 %v223_v22 }
  0x83   :  { %vm37_vm3 = vmor %vm35_vm2, %vm36_vm1 }
  0x84   :  { %v31_v24 = vmul.f32 %v223_v22, %v30_v23 }
  0x86   :  { %v32_v25 = vmul.f32 0.5, %v31_v24 }
  0x88   :  { %v33_v26 = vsub.f32 1.5, %v32_v25  ;;  %v172_v59 = vld [vmem:[#allocation5] sm:$0xff] }
  0x8a   :  { %v34_v27 = vmul.f32 %v223_v22, %v33_v26 }
  0x8c   :  { %v38_v28 = vsel %vm37_vm3, %v223_v22, %v34_v27 }
  0x8d   :  { %v39_v29 = vmul.f32 20.0, %v38_v28 }
  0x8f   :  { %v40_v30 = vmul.f32 %v39_v29, %v22_v0 }
  0x91   :  { %41 = vst.msk [vmem:[#allocation6] sm:$0xff] %vm24_vm0, %v40_v30 }
  0x92   :  { %191 = dma.vmem_to_hbm [thread:$0]  %s187_s2, 128, %s189_s29, [#allocation7]  }
  0x98   :  { %v47_v31 = vld [vmem:[#allocation6] sm:$0xff] }
  0x99   :  { %217 = vmatmul.msk.f32.vlgmr.msra.gmra.mxu0 %vm24_vm0, %v47_v31 }
 0x116   :  { %v133_v37 = vpop.f32.mrf.mxu0 }
 0x117   :  { %v218_v38 = vadd.f32 -20.0, %v133_v37  ;;  %v147_v39 = vmul.f32 %v136_v21, %v133_v37 }
 0x119   :  { %v139_v40 = vmul.f32 1.442695, %v218_v38  ;;  %148 = vadd.xlane.f32.xlu1 %v147_v39 }
 0x11b   :  { %224 = vpow2.f32 %v139_v40 }
 0x11c   :  { %226 = vpow2.f32 %v163_v47 }
 0x121   :  { %v225_v41 = vpop.eup %224 }
 0x122   :  { %141 = vadd.xlane.f32.xlu0 %v225_v41  ;;  %v227_v51 = vpop.eup %226 }
 0x123   :  { %v165_v52 = vmul.f32 112.0, %v227_v51 }
 0x18c   :  { %v149_v45 = vpop.xlane.xlu1 %148 }
 0x18d   :  { %v150_v46 = vadd.f32 %v149_v45, %v146_v43 }
 0x18f   :  { %151 = vst.msk [vmem:[#allocation4] sm:$0xff] %vm42_vm4, %v150_v46 }
 0x195   :  { %v142_v49 = vpop.xlane.xlu0 %141 }
 0x196   :  { %v143_v50 = vadd.f32 %v142_v49, %v137_v48  ;;  %v174_v61 = vld [vmem:[#allocation4] sm:$0xff] }
 0x198   :  { %145 = vst.msk [vmem:[#allocation3] sm:$0xff] %vm42_vm4, %v143_v50 }
 0x19f   :  { %v161_v53 = vld [vmem:[#allocation3] sm:$0xff] }
 0x1a0   :  { %v166_v54 = vsub.f32 %v161_v53, %v165_v52 }
 0x1a2   :  { %v167_v55 = vmax.f32 %v166_v54, 1e-30 }
 0x1a4   :  { %228 = vlog2.f32 %v167_v55 }
 0x1aa   :  { %v229_v56 = vpop.eup %228 }
 0x1ab   :  { %v169_v57 = vmul.f32 0.6931472, %v229_v56 }
 0x1ad   :  { %v170_v58 = vadd.f32 %v169_v57, %v160_v42 }
 0x1af   :  { %171 = vst.msk [vmem:[%s384_s4] sm:$0xff] %vm42_vm4, %v170_v58  ;;  %v173_v60 = vmul.f32 %v172_v59, %v170_v58 }
 0x1b1   :  { %v175_v62 = vsub.f32 %v173_v60, %v174_v61 }
 0x1b3   :  { %176 = vst.msk [vmem:[%s383_s3] sm:$0xff] %vm42_vm4, %v175_v62 }
 0x1b4   :  { %254 = dma.done.wait [#allocation7], 128  }
 0x1b5   :  { %255 = vsyncadd [#allocation7], 4294967168 }
 0x1b6   :  { %200 = vsyncpa [#allocation7], 1 }

</bundles_post_ra>
